<compile_context>
chip_gen: v7x
topology: tpu7x:2x2x1
jax: 0.10.0
libtpu: 0.0.40
codegen_flags: <defaults>
</compile_context>

<pallas_src>
from typing import Dict, List

import jax
import jax.numpy as jnp
from jax.experimental import pallas as pl
from jax.experimental.pallas import tpu as pltpu


def _round_up(x: int, m: int) -> int:
    return ((x + m - 1) // m) * m


def _taxonomy_head_kernel(x_ref, w_ref, b_ref, rhs_ref, out_ref):
    """One batch tile, taxonomy path.

    x:   (TB, F)        features tile (native dtype)
    w:   (F, Cpad)      transposed, zero-padded linear weight
    b:   (1, Cpad)      f32 bias; padded classes set to -1e30 (exp -> 0)
    rhs: (Cpad, Spad)   [I_C | adder_0 | adder_1 | ...] zero-padded
    out: (TB, Spad)     fused slab [softmax scores | taxonomy scores | 0-pad]
    """
    logits = (
        jnp.dot(x_ref[...], w_ref[...], preferred_element_type=jnp.float32)
        + b_ref[...]
    )
    # Numerically stable softmax over the padded class axis; padded lanes carry
    # logit -1e30 so exp(logit - m) == 0 and they drop out of the sum.
    m = jnp.max(logits, axis=-1, keepdims=True)
    e = jnp.exp(logits - m)
    denom = jnp.sum(e, axis=-1, keepdims=True)

    # Single fused matmul on the unnormalized exponentials: the identity block
    # passes `e` through exactly, the adder block produces the taxonomy sums.
    slab = jnp.dot(e, rhs_ref[...], preferred_element_type=jnp.float32)

    # Exact normalization (kernel is mem-bound; exact reciprocal is free) and a
    # single unmasked, full-lane-width store.
    inv = 1.0 / denom
    out_ref[...] = (slab * inv).astype(out_ref.dtype)


def _softmax_only_kernel(x_ref, w_ref, b_ref, out_ref):
    """One batch tile, no taxonomies: just the softmax scores."""
    logits = (
        jnp.dot(x_ref[...], w_ref[...], preferred_element_type=jnp.float32)
        + b_ref[...]
    )
    m = jnp.max(logits, axis=-1, keepdims=True)
    e = jnp.exp(logits - m)
    denom = jnp.sum(e, axis=-1, keepdims=True)
    out_ref[...] = (e * (1.0 / denom)).astype(out_ref.dtype)


def make_taxonomy_head(weight, bias, adders, *, batch_tile=1024,
                       out_dtype=jnp.float32, param_dtype=jnp.float32):
    """Build a jitted forward for TaxonomyHead.

    weight: (C, F) f32 (nn.Linear layout); bias: (C,); adders: list of (C, G_i).
    Parameter padding/packing is done ONCE here, not per forward call.
    Returns fn(features:(B,F)) -> [scores (B,C), taxo_0 (B,G_0), ...].
    """
    C, F = int(weight.shape[0]), int(weight.shape[1])
    group_sizes = tuple(int(a.shape[1]) for a in adders)
    gsum = sum(group_sizes)
    has_taxonomy = len(group_sizes) > 0

    cpad = _round_up(C, 128)
    # Jointly pad scores + all taxonomy columns to one lane-dense slab.
    spad = _round_up(C + gsum, 128) if has_taxonomy else cpad

    w_pad = jnp.zeros((F, cpad), param_dtype).at[:, :C].set(
        weight.T.astype(param_dtype))
    b_pad = jnp.full((1, cpad), -1e30, jnp.float32).at[0, :C].set(
        bias.astype(jnp.float32))
    if has_taxonomy:
        rhs = jnp.zeros((cpad, spad), jnp.float32)
        rhs = rhs.at[:C, :C].set(jnp.eye(C, dtype=jnp.float32))
        adder_cat = jnp.concatenate([a.astype(jnp.float32) for a in adders],
                                    axis=1)
        rhs = rhs.at[:C, C:C + gsum].set(adder_cat)
    else:
        rhs = None

    param_bytes = (F * cpad * jnp.dtype(param_dtype).itemsize
                   + cpad * 4
                   + (cpad * spad * 4 if has_taxonomy else 0))

    def forward(features):
        B, f_in = features.shape
        assert f_in == F, "feature dim mismatch"

        # Batch tiling: TB multiple of 8 (sublane).  Ensure >=2 grid steps when
        # the batch is big enough so both v7x TensorCores get work.
        tb = min(batch_tile, _round_up(B, 8))
        if B >= 16:
            tb = min(tb, _round_up((B + 1) // 2, 8))
        b_padded = _round_up(B, tb)

        x = features
        if b_padded != B:
            x = jnp.pad(x, ((0, b_padded - B), (0, 0)))
        grid = (b_padded // tb,)

        # VMEM budget: double-buffered x/out tiles + resident params (+2x headroom).
        x_bytes = jnp.dtype(x.dtype).itemsize
        o_bytes = jnp.dtype(out_dtype).itemsize
        vmem_bytes = 2 * tb * F * x_bytes + 2 * tb * spad * o_bytes + 2 * param_bytes
        vmem_limit = int(min(max(2 * vmem_bytes, 4 << 20), 32 << 20))

        in_specs = [
            pl.BlockSpec((tb, F), lambda i: (i, 0)),      # features: tiled over batch
            pl.BlockSpec((F, cpad), lambda i: (0, 0)),    # weight: VMEM-resident
            pl.BlockSpec((1, cpad), lambda i: (0, 0)),    # bias:   VMEM-resident
        ]
        args = [x, w_pad, b_pad]
        if has_taxonomy:
            in_specs.append(pl.BlockSpec((cpad, spad), lambda i: (0, 0)))
            args.append(rhs)
            kernel = _taxonomy_head_kernel
        else:
            kernel = _softmax_only_kernel

        out = pl.pallas_call(
            kernel,
            out_shape=jax.ShapeDtypeStruct((b_padded, spad), out_dtype),
            grid=grid,
            in_specs=in_specs,
            out_specs=pl.BlockSpec((tb, spad), lambda i: (i, 0)),
            compiler_params=pltpu.CompilerParams(
                dimension_semantics=("parallel",),
                vmem_limit_bytes=vmem_limit,
            ),
        )(*args)

        # Slice the fused slab back into the module's list-of-tensors output.
        outputs = [out[:B, :C]]
        off = C
        for g in group_sizes:
            outputs.append(out[:B, off:off + g])
            off += g
        return outputs

    return jax.jit(forward)


def build_adder(num_classes: int, taxonomy: Dict[int, List[int]]) -> jnp.ndarray:
    """Mirror of the adder construction in TaxonomyHead.__init__."""
    adder = jnp.zeros((num_classes, len(taxonomy)), dtype=jnp.float32)
    for parent, children in taxonomy.items():
        adder = adder.at[jnp.array(children), parent].set(1.0)
    return adder


if __name__ == "__main__":
    # Small shapes consistent with the module: features (B, in_features).
    B, F, C = 8, 32, 16

    taxonomies = [
        {0: [0, 1, 2, 3], 1: [4, 5, 6, 7], 2: [8, 9, 10, 11], 3: [12, 13, 14, 15]},
        {0: list(range(0, 8)), 1: list(range(8, 16))},
    ]
    adders = [build_adder(C, t) for t in taxonomies]

    key = jax.random.PRNGKey(0)
    k_x, k_w, k_b = jax.random.split(key, 3)
    features = jax.random.normal(k_x, (B, F), dtype=jnp.float32)
    # nn.Linear(in_features, num_classes): weight (C, F), bias (C,).
    weight = jax.random.normal(k_w, (C, F), dtype=jnp.float32) * 0.1
    bias = jax.random.normal(k_b, (C,), dtype=jnp.float32) * 0.1

    head = make_taxonomy_head(weight, bias, adders)
    outputs = head(features)
    outputs = jax.block_until_ready(outputs)

    # Pure-JAX reference (same invariant the module asserts: rows sum to 1).
    logits_ref = features @ weight.T + bias
    scores_ref = jax.nn.softmax(logits_ref, axis=1)
    refs = [scores_ref] + [scores_ref @ a for a in adders]

    for out, ref in zip(outputs, refs):
        assert out.shape == ref.shape, "shape mismatch vs reference"
        assert jnp.allclose(out, ref, atol=2e-3, rtol=2e-3), "mismatch vs reference"
        assert jnp.allclose(out.sum(axis=1), 1.0, atol=1e-3), "rows must sum to 1"

    print("KERNEL_OK")
</pallas_src>

<mosaic_0001>
module attributes {stable_mosaic.version = 11 : i64} {
  func.func @_taxonomy_head_kernel(%arg0: i32, %arg1: memref<8x32xf32, #tpu.memory_space<vmem>>, %arg2: memref<32x128xf32, #tpu.memory_space<vmem>>, %arg3: memref<1x128xf32, #tpu.memory_space<vmem>>, %arg4: memref<128x128xf32, #tpu.memory_space<vmem>>, %arg5: memref<8x128xf32, #tpu.memory_space<vmem>>) attributes {dimension_semantics = [#tpu.dimension_semantics<parallel>], iteration_bounds = array<i64: 1>, scalar_prefetch = 0 : i64, scratch_operands = 0 : i64, tpu.core_type = #tpu.core_type<tc>, window_params = [{transform_indices = @transform_0, window_bounds = array<i64: 8, 32>}, {pipeline_mode = #tpu.pipeline_mode<synchronous>, transform_indices = @transform_1, window_bounds = array<i64: 32, 128>}, {pipeline_mode = #tpu.pipeline_mode<synchronous>, transform_indices = @transform_2, window_bounds = array<i64: 1, 128>}, {pipeline_mode = #tpu.pipeline_mode<synchronous>, transform_indices = @transform_3, window_bounds = array<i64: 128, 128>}, {transform_indices = @transform_4, window_bounds = array<i64: 8, 128>}]} {
    %c0 = arith.constant 0 : index
    %c0_0 = arith.constant 0 : index
    %0 = vector.load %arg1[%c0, %c0_0] : memref<8x32xf32, #tpu.memory_space<vmem>>, vector<8x32xf32>
    %c0_1 = arith.constant 0 : index
    %c0_2 = arith.constant 0 : index
    %1 = vector.load %arg2[%c0_1, %c0_2] : memref<32x128xf32, #tpu.memory_space<vmem>>, vector<32x128xf32>
    %cst = arith.constant dense<0.000000e+00> : vector<8x128xf32>
    %2 = tpu.matmul %0, %1, %cst {dimension_numbers = #tpu.dot_dimension_numbers<[1], [0], [0], [1], [0, 0, 1, 1], [], []>} : vector<8x32xf32>, vector<32x128xf32>, vector<8x128xf32> -> vector<8x128xf32>
    %c0_3 = arith.constant 0 : index
    %c0_4 = arith.constant 0 : index
    %3 = vector.load %arg3[%c0_3, %c0_4] : memref<1x128xf32, #tpu.memory_space<vmem>>, vector<1x128xf32>
    %4 = vector.broadcast %3 : vector<1x128xf32> to vector<8x128xf32>
    %5 = arith.addf %2, %4 : vector<8x128xf32>
    %cst_5 = arith.constant dense<0xFF800000> : vector<8xf32>
    %6 = vector.multi_reduction <maximumf>, %5, %cst_5 [1] : vector<8x128xf32> to vector<8xf32>
    %7 = vector.shape_cast %6 : vector<8xf32> to vector<8x1xf32>
    %8 = vector.broadcast %7 : vector<8x1xf32> to vector<8x128xf32>
    %9 = arith.subf %5, %8 : vector<8x128xf32>
    %10 = math.exp %9 : vector<8x128xf32>
    %cst_6 = arith.constant dense<0.000000e+00> : vector<8xf32>
    %11 = vector.multi_reduction <add>, %10, %cst_6 [1] : vector<8x128xf32> to vector<8xf32>
    %12 = vector.shape_cast %11 : vector<8xf32> to vector<8x1xf32>
    %c0_7 = arith.constant 0 : index
    %c0_8 = arith.constant 0 : index
    %13 = vector.load %arg4[%c0_7, %c0_8] : memref<128x128xf32, #tpu.memory_space<vmem>>, vector<128x128xf32>
    %cst_9 = arith.constant dense<0.000000e+00> : vector<8x128xf32>
    %14 = tpu.matmul %10, %13, %cst_9 {dimension_numbers = #tpu.dot_dimension_numbers<[1], [0], [0], [1], [0, 0, 1, 1], [], []>} : vector<8x128xf32>, vector<128x128xf32>, vector<8x128xf32> -> vector<8x128xf32>
    %cst_10 = arith.constant 1.000000e+00 : f32
    %15 = vector.broadcast %cst_10 : f32 to vector<8x1xf32>
    %16 = arith.divf %15, %12 : vector<8x1xf32>
    %17 = vector.broadcast %16 : vector<8x1xf32> to vector<8x128xf32>
    %18 = arith.mulf %14, %17 : vector<8x128xf32>
    %c0_11 = arith.constant 0 : index
    %c0_12 = arith.constant 0 : index
    %19 = vector.load %arg5[%c0_11, %c0_12] : memref<8x128xf32, #tpu.memory_space<vmem>>, vector<8x128xf32>
    tpu.vector_store %arg5[%c0_11, %c0_12], %18 {strides = array<i32>} : memref<8x128xf32, #tpu.memory_space<vmem>>, vector<8x128xf32>,
    return
  }
  func.func @transform_0(%arg0: i32) -> (i32, i32) {
    %c0_i32 = arith.constant 0 : i32
    %c0_i32_0 = arith.constant 0 : i32
    return %arg0, %c0_i32 : i32, i32
  }
  func.func @transform_1(%arg0: i32) -> (i32, i32) {
    %c0_i32 = arith.constant 0 : i32
    %c0_i32_0 = arith.constant 0 : i32
    %c0_i32_1 = arith.constant 0 : i32
    return %c0_i32, %c0_i32_0 : i32, i32
  }
  func.func @transform_2(%arg0: i32) -> (i32, i32) {
    %c0_i32 = arith.constant 0 : i32
    %c0_i32_0 = arith.constant 0 : i32
    %c0_i32_1 = arith.constant 0 : i32
    return %c0_i32, %c0_i32_0 : i32, i32
  }
  func.func @transform_3(%arg0: i32) -> (i32, i32) {
    %c0_i32 = arith.constant 0 : i32
    %c0_i32_0 = arith.constant 0 : i32
    %c0_i32_1 = arith.constant 0 : i32
    return %c0_i32, %c0_i32_0 : i32, i32
  }
  func.func @transform_4(%arg0: i32) -> (i32, i32) {
    %c0_i32 = arith.constant 0 : i32
    %c0_i32_0 = arith.constant 0 : i32
    return %arg0, %c0_i32 : i32, i32
  }
}

</mosaic_0001>

<bundles_post_ra>
// kernel: forward.1
= control target key start
LH: loop header
LB: loop body
LE: loop exit
PB: predicated region body
PF: predicated region fallthrough
CT: control target
= control target key end

     0   :  { %9 = vsyncpa [#allocation3], 0  ;;  %s508_s0 = inlined_call_operand.hbm [shape: f32[8,32], index: 0, kind: input, shape index: {}]   ;;  %s509_s1 = inlined_call_operand.hbm [shape: f32[32,128], index: 1, kind: input, shape index: {}]   ;;  %s510_s2 = inlined_call_operand.vmem [shape: f32[1,128], index: 2, kind: input, shape index: {}]   ;;  %s511_s3 = inlined_call_operand.hbm [shape: f32[128,128], index: 3, kind: input, shape index: {}]   ;;  %s512_s4 = inlined_call_operand.vmem [shape: f32[8,128], index: 4, kind: output, shape index: {}]  }
   0x1   :  { %10 = vsyncpa [#allocation5], 0  ;;  %s427_s15 = smov [#allocation4]   ;;  %s357_s19 = scalar_lea.hbm %s509_s1, 512 }
   0x2   :  { %s26_s16 = sshll.u32 %s427_s15, 4  ;;  %p358_p0 = scmp.ne.s32.totalorder %s509_s1, %s357_s19  ;;  %s27_s16 = int_to_ptr.vmem [resolvable:$true] %s26_s16 }
   0x3   :  { %p361_p1 = scmp.lt.u32.totalorder %s357_s19, %s509_s1 }
   0x5   :  { %p363_p2 = pnand %p361_p1, %p358_p0 }
   0x7   :  { %366 = shalt.err (!%p363_p2)
}
   0x8   :  { %s367_s24 = scalar_lea.vmem %s27_s16, 512  ;;  %p372_p4 = scmp.lt.s32.totalorder %s27_s16, %s27_s16 }
   0x9   :  { %p368_p3 = scmp.ne.s32.totalorder %s27_s16, %s367_s24  ;;  %p373_p5 = scmp.lt.s32.totalorder %s367_s24, %s367_s24 }
   0xb   :  { %p374_p6 = por %p373_p5, %p372_p4 }
   0xd   :  { %p375_p7 = pnand %p374_p6, %p368_p3 }
   0xf   :  { %378 = shalt.err (!%p375_p7)
}
  0x10   :  { %s428_s25 = smov 128   ;;  %s429_s26 = smov 8  }
  0x11   :  { %32 = dma.hbm_to_vmem [thread:$0]  %s509_s1, 512, %s27_s16, [#allocation5], %s428_s25, %s428_s25, %s429_s26  }
  0x12   :  { %s430_s29 = smov [#allocation2]   ;;  %s431_s5 = smov [#allocation6]  }
  0x13   :  { %s17_s30 = sshll.u32 %s430_s29, 4  ;;  %s40_s6 = sshll.u32 %s431_s5, 4  ;;  %s18_s30 = int_to_ptr.vmem [resolvable:$true] %s17_s30  ;;  %s41_s6 = int_to_ptr.vmem [resolvable:$true] %s40_s6 }
  0x14   :  { %s379_s9 = scalar_lea.hbm %s508_s0, 128 }
  0x15   :  { %p380_p8 = scmp.ne.s32.totalorder %s508_s0, %s379_s9  ;;  %p383_p9 = scmp.lt.u32.totalorder %s379_s9, %s508_s0 }
  0x17   :  { %p385_p10 = pnand %p383_p9, %p380_p8 }
  0x19   :  { %388 = shalt.err (!%p385_p10)
}
  0x1a   :  { %s389_s1 = scalar_lea.vmem %s18_s30, 128  ;;  %p394_p12 = scmp.lt.s32.totalorder %s18_s30, %s18_s30 }
  0x1b   :  { %p390_p11 = scmp.ne.s32.totalorder %s18_s30, %s389_s1  ;;  %p395_p13 = scmp.lt.s32.totalorder %s389_s1, %s389_s1 }
  0x1d   :  { %p396_p0 = por %p395_p13, %p394_p12 }
  0x1f   :  { %p397_p1 = pnand %p396_p0, %p390_p11 }
  0x21   :  { %400 = shalt.err (!%p397_p1)
}
  0x22   :  { %20 = dma.hbm_to_vmem [thread:$0]  %s508_s0, 128, %s18_s30, [#allocation3]  }
  0x23   :  { %s401_s18 = scalar_lea.hbm %s511_s3, 2048 }
  0x24   :  { %p402_p2 = scmp.ne.s32.totalorder %s511_s3, %s401_s18  ;;  %p405_p3 = scmp.lt.u32.totalorder %s401_s18, %s511_s3 }
  0x26   :  { %p407_p4 = pnand %p405_p3, %p402_p2 }
  0x28   :  { %410 = shalt.err (!%p407_p4)
}
  0x29   :  { %s411_s23 = scalar_lea.vmem %s41_s6, 2048  ;;  %p416_p6 = scmp.lt.s32.totalorder %s41_s6, %s41_s6 }
  0x2a   :  { %p412_p5 = scmp.ne.s32.totalorder %s41_s6, %s411_s23  ;;  %p417_p7 = scmp.lt.s32.totalorder %s411_s23, %s411_s23 }
  0x2c   :  { %p418_p8 = por %p417_p7, %p416_p6 }
  0x2e   :  { %p419_p9 = pnand %p418_p8, %p412_p5 }
  0x30   :  { %422 = shalt.err (!%p419_p9)
}
  0x31   :  { %46 = dma.hbm_to_vmem [thread:$0]  %s511_s3, 2048, %s41_s6, [#allocation5], %s428_s25, %s428_s25, %s429_s26  }
  0x32   :  { %423 = dma.done.wait [#allocation3], 128  }
  0x33   :  { %424 = vsyncadd [#allocation3], 4294967168 }
  0x34   :  { %425 = dma.done.wait [#allocation5], 2560  }
  0x35   :  { %426 = vsyncadd [#allocation5], 4294964736  ;;  %v432_v0 = vmov 0.0|0.0   ;;  %vm433_vm0 = vmmov 0   ;;  %v434_v1 = vmov 0.0   ;;  %v57_v2 = vld [vmem:[#allocation4] sm:$0xff] }
  0x36   :  { %315 = vmatprep.subr.bf16.mxu0 %v432_v0  ;;  %277 = vmatprep.mubr.msk.f32.mxu0 %vm433_vm0, %v434_v1  ;;  %v58_v3 = vld [vmem:[#allocation4 + $0x8] sm:$0xff]  ;;  %v59_v4 = vld [vmem:[#allocation4 + $0x10] sm:$0xff]  ;;  %v60_v6 = vld [vmem:[#allocation4 + $0x18] sm:$0xff]  ;;  %vm68_vm1 = vcmask 261120  }
  0x37   :  { %321 = vmatprep.subr.bf16.mxu1 %v432_v0  ;;  %312 = vmatprep.mubr.msk.f32.mxu1 %vm433_vm0, %v434_v1  ;;  %v316_v5 = vpack.c.bf16 %v58_v3, %v57_v2  ;;  %v319_v7 = vpack.c.bf16 %v60_v6, %v59_v4  ;;  %v56_v8 = vld [vmem:[#allocation2] sm:$0xff]  ;;  %v149_v9 = vld [vmem:[#allocation6] sm:$0xff]  ;;  %v150_v10 = vld [vmem:[#allocation6 + $0x8] sm:$0xff] }
  0x38   :  { %v151_v11 = vld [vmem:[#allocation6 + $0x10] sm:$0xff]  ;;  %v322_v12 = vpack.c.bf16 %v150_v10, %v149_v9  ;;  %v152_v13 = vld [vmem:[#allocation6 + $0x18] sm:$0xff]  ;;  %v153_v15 = vld [vmem:[#allocation6 + $0x20] sm:$0xff] }
  0x39   :  { %317 = vmatpush3.bf16.msra.mxu0 %v316_v5  ;;  %v325_v14 = vpack.c.bf16 %v152_v13, %v151_v11  ;;  %v154_v16 = vld [vmem:[#allocation6 + $0x28] sm:$0xff]  ;;  %v155_v18 = vld [vmem:[#allocation6 + $0x30] sm:$0xff]  ;;  %v156_v19 = vld [vmem:[#allocation6 + $0x38] sm:$0xff] }
  0x3a   :  { %318 = vmatprep.subr.bf16.mxu0 %v432_v0  ;;  %323 = vmatpush3.bf16.msra.mxu1 %v322_v12  ;;  %v328_v17 = vpack.c.bf16 %v154_v16, %v153_v15  ;;  %v331_v20 = vpack.c.bf16 %v156_v19, %v155_v18  ;;  %v245_v21 = vld [vmem:[%s510_s2] ss:$0 sm:$0xff]  ;;  %v157_v25 = vld [vmem:[#allocation6 + $0x40] sm:$0xff]  ;;  %v158_v26 = vld [vmem:[#allocation6 + $0x48] sm:$0xff] }
  0x3b   :  { %324 = vmatprep.subr.bf16.mxu1 %v432_v0  ;;  %v334_v27 = vpack.c.bf16 %v158_v26, %v157_v25  ;;  %v159_v28 = vld [vmem:[#allocation6 + $0x50] sm:$0xff]  ;;  %v160_v29 = vld [vmem:[#allocation6 + $0x58] sm:$0xff]  ;;  %v161_v31 = vld [vmem:[#allocation6 + $0x60] sm:$0xff] }
  0x3c   :  { %v337_v30 = vpack.c.bf16 %v160_v29, %v159_v28  ;;  %v162_v32 = vld [vmem:[#allocation6 + $0x68] sm:$0xff]  ;;  %v163_v34 = vld [vmem:[#allocation6 + $0x70] sm:$0xff]  ;;  %v164_v35 = vld [vmem:[#allocation6 + $0x78] sm:$0xff] }
  0x3d   :  { %320 = vmatpush3.bf16.msra.mxu0 %v319_v7  ;;  %v340_v33 = vpack.c.bf16 %v162_v32, %v161_v31  ;;  %v343_v36 = vpack.c.bf16 %v164_v35, %v163_v34 }
  0x3e   :  { %326 = vmatpush3.bf16.msra.mxu1 %v325_v14 }
  0x3f   :  { %327 = vmatprep.subr.bf16.mxu1 %v432_v0 }
  0x40   :  { %278 = vmatmul.mubr.msk.f32.vlgmr.msra.gmra.mrb[0].mxu0 %vm68_vm1, %v56_v8 }
  0x42   :  { %329 = vmatpush3.bf16.msra.mxu1 %v328_v17 }
  0x43   :  { %330 = vmatprep.subr.bf16.mxu1 %v432_v0 }
  0x46   :  { %332 = vmatpush3.bf16.msra.mxu1 %v331_v20 }
  0x47   :  { %333 = vmatprep.subr.bf16.mxu1 %v432_v0 }
  0x4a   :  { %335 = vmatpush3.bf16.msra.mxu1 %v334_v27 }
  0x4b   :  { %336 = vmatprep.subr.bf16.mxu1 %v432_v0 }
  0x4e   :  { %338 = vmatpush3.bf16.msra.mxu1 %v337_v30 }
  0x4f   :  { %339 = vmatprep.subr.bf16.mxu1 %v432_v0 }
  0x52   :  { %341 = vmatpush3.bf16.msra.mxu1 %v340_v33 }
  0x53   :  { %342 = vmatprep.subr.bf16.mxu1 %v432_v0 }
  0x56   :  { %344 = vmatpush3.bf16.msra.mxu1 %v343_v36 }
 0x113   :  { %v138_v22 = vpop.f32.mrb[0].mxu0 }
 0x114   :  { %v139_v23 = vadd.f32 %v245_v21, %v138_v22  ;;  %v279_v24 = vpop.f32.mrb[1].mxu0 }
 0x116   :  { %142 = vmax.xlane.f32.xlu0 %v139_v23 }
 0x1a3   :  { %v143_v37 = vpop.xlane.xlu0 %142 }
 0x1a4   :  { %v144_v38 = vsub.f32 %v139_v23, %v143_v37 }
 0x1a6   :  { %v145_v39 = vmul.f32 1.442695, %v144_v38 }
 0x1a8   :  { %353 = vpow2.f32 %v145_v39 }
 0x1b2   :  { %v354_v40 = vpop.eup %353 }
 0x1b3   :  { %147 = vadd.xlane.f32.xlu0 %v354_v40  ;;  %313 = vmatmul.mubr.f32.vlgmr.msra.gmra.mrb[0].mxu1 %v354_v40 }
 0x240   :  { %v148_v41 = vpop.xlane.xlu0 %147 }
 0x241   :  { %355 = vrcp.f32 %v148_v41 }
 0x24b   :  { %v356_v42 = vpop.eup %355 }
 0x286   :  { %v231_v43 = vpop.f32.mrb[0].mxu1 }
 0x287   :  { %v237_v44 = vmul.f32 %v356_v42, %v231_v43  ;;  %v314_v45 = vpop.f32.mrb[1].mxu1 }
 0x289   :  { %238 = vst [vmem:[%s512_s4] sm:$0xff] %v237_v44 }
 0x28a   :  { %243 = vsyncpa [#allocation3], 1 }
 0x28b   :  { %244 = vsyncpa [#allocation5], 1 }

</bundles_post_ra>
